<compile_context>
chip_gen: v7x
topology: tpu7x:2x2x1
jax: 0.10.0
libtpu: 0.0.40
codegen_flags: <defaults>
</compile_context>

<pallas_src>
import math
import functools

import jax
import jax.numpy as jnp
from jax import lax
from jax.experimental import pallas as pl
from jax.experimental.pallas import tpu as pltpu

_INV_SQRT2 = 1.0 / math.sqrt(2.0)
_LANES = 128


def _ffn_fused_kernel(wt_ref, bf_ref, x_ref, o_ref, *, channels):
    """wt_ref: (C*C,) f32 SMEM, output-major: wt[co*C + ci] (fused conv weight).
    bf_ref: (C,)   f32 SMEM, fused bias.
    x_ref / o_ref: (1, C, TR, 128) VMEM blocks; spatial occupies the dense
    (sublane, lane) plane, channels sit on a leading axis."""
    # Hoist channel loads: each input channel read from VMEM exactly once.
    xc = [x_ref[0, ci].astype(jnp.float32) for ci in range(channels)]
    for co in range(channels):
        # Tiny (CxC) channel contraction as unrolled lane-dense VPU FMAs
        # (MXU would be <1% utilized at C=4).
        acc = xc[0] * wt_ref[co * channels + 0]
        for ci in range(1, channels):
            acc = acc + xc[ci] * wt_ref[co * channels + ci]
        acc = acc + bf_ref[co]
        # nn.GELU() default (exact erf), folded form: x*(0.5*erf(x/sqrt2)+0.5).
        acc = acc * (0.5 * lax.erf(acc * jnp.float32(_INV_SQRT2)) + 0.5)
        o_ref[0, co] = acc.astype(o_ref.dtype)


def ffn_conv1x1_block(x_nchw, w1, b1, w2, b2, *,
                      tile_bytes=8 * 1024 * 1024,
                      vmem_limit_bytes=32 * 1024 * 1024):
    """Forward of FFNConv1x1Block (deploy=False, train_act=True, use_bn=False).

    x_nchw: (N, C, H, W); w1: (C, F) == conv1.weight[f, c, 0, 0].T; b1: (F,);
    w2: (F, C) == conv2.weight[c, f, 0, 0].T; b2: (C,).
    """
    N, C, H, W = x_nchw.shape
    S = H * W
    itemsize = jnp.dtype(x_nchw.dtype).itemsize

    # The module hardcodes act_learn = 1, so leaky_relu(y, 1) == y and the two
    # 1x1 convs fold exactly (same algebra as get_equivalent_kernel_bias).
    # TODO(synk): if act_learn is ever != 1, this fold is invalid; keep an
    # unfused two-matmul path guarded on that value.
    w1f = w1.astype(jnp.float32)
    w2f = w2.astype(jnp.float32)
    wt = jnp.transpose(w1f @ w2f).reshape(-1)                       # (C*C,) output-major
    bf = b1.astype(jnp.float32) @ w2f + b2.astype(jnp.float32)      # (C,)

    # Re-layout spatial onto (sublane, lane): (N,C,H,W) -> (N,C,S) -> pad S to
    # a multiple of 128 (single cheap pad, only if needed) -> (N,C,R,128).
    s_pad = -(-S // _LANES) * _LANES
    x3 = x_nchw.reshape(N, C, S)
    if s_pad != S:
        x3 = jnp.pad(x3, ((0, 0), (0, 0), (0, s_pad - S)))
    rows = s_pad // _LANES
    x4 = x3.reshape(N, C, rows, _LANES)

    # Row-tile size: largest multiple of 8 keeping (in + out) per grid step
    # <= tile_bytes (so x2 double-buffering stays well inside scoped VMEM on
    # every generation, incl. v7x's 64 MiB part).
    max_tr = max(8, (tile_bytes // (2 * C * _LANES * itemsize)) // 8 * 8)
    if rows <= max_tr:
        tr = rows                       # full dim -> always layout-legal
        if N == 1 and rows > 8:
            # v7x has 2 TensorCores: expose >= 2 parallel grid steps.
            tr = min(rows, ((-(-rows // 2) + 7) // 8) * 8)
    else:
        tr = max_tr

    grid = (N, pl.cdiv(rows, tr))
    kernel = functools.partial(_ffn_fused_kernel, channels=C)

    out4 = pl.pallas_call(
        kernel,
        out_shape=jax.ShapeDtypeStruct((N, C, rows, _LANES), x_nchw.dtype),
        grid_spec=pltpu.PrefetchScalarGridSpec(
            num_scalar_prefetch=0,
            grid=grid,
            in_specs=[
                pl.BlockSpec(memory_space=pltpu.MemorySpace.SMEM),      # wt (C*C,)
                pl.BlockSpec(memory_space=pltpu.MemorySpace.SMEM),      # bf (C,)
                pl.BlockSpec((1, C, tr, _LANES), lambda n, s: (n, 0, s, 0)),
            ],
            out_specs=pl.BlockSpec((1, C, tr, _LANES), lambda n, s: (n, 0, s, 0)),
        ),
        compiler_params=pltpu.CompilerParams(
            dimension_semantics=("parallel", "parallel"),
            vmem_limit_bytes=vmem_limit_bytes,
        ),
    )(wt, bf, x4)

    out3 = out4.reshape(N, C, s_pad)
    if s_pad != S:
        out3 = out3[:, :, :S]
    return out3.reshape(N, C, H, W)


if __name__ == "__main__":
    # Module config: inp_planes=4, FFN_Expand=2 -> ffn_channels=8,
    # act_type='gelu', train_act=True, use_bn=False, deploy=False.
    N, C, H, W = 2, 4, 16, 16
    FFN_EXPAND = 2
    F = C * FFN_EXPAND

    key = jax.random.PRNGKey(0)
    kx, kw1, kb1, kw2, kb2 = jax.random.split(key, 5)

    x = jax.random.normal(kx, (N, C, H, W), dtype=jnp.float32)

    # Conv parameters kept as (in, out) matrices (PyTorch weights would be
    # (out, in, 1, 1); w[in, out] = torch_weight[out, in, 0, 0]).
    w1 = jax.random.normal(kw1, (C, F), dtype=jnp.float32) * 0.1   # conv1: C -> F
    b1 = jax.random.normal(kb1, (F,), dtype=jnp.float32) * 0.1
    w2 = jax.random.normal(kw2, (F, C), dtype=jnp.float32) * 0.1   # conv2: F -> C
    b2 = jax.random.normal(kb2, (C,), dtype=jnp.float32) * 0.1

    y = ffn_conv1x1_block(x, w1, b1, w2, b2)
    jax.block_until_ready(y)

    # Pure-JAX reference following the PyTorch forward exactly (un-folded):
    # conv1 -> leaky_relu(slope=act_learn=1) -> conv2 -> exact GELU.
    x2d = jnp.transpose(x, (0, 2, 3, 1)).reshape(-1, C)
    h = x2d @ w1 + b1
    h = jnp.where(h >= 0, h, 1.0 * h)
    r = h @ w2 + b2
    r = 0.5 * r * (1.0 + lax.erf(r / jnp.sqrt(2.0)))
    ref = jnp.transpose(r.reshape(N, H, W, C), (0, 3, 1, 2))

    assert y.shape == (N, C, H, W)
    err = float(jnp.max(jnp.abs(y - ref)))
    assert jnp.allclose(y, ref, atol=1e-5, rtol=1e-5), err
    print("KERNEL_OK")
</pallas_src>

<mosaic_0001>
module attributes {stable_mosaic.version = 11 : i64} {
  func.func @_ffn_fused_kernel(%arg0: i32, %arg1: i32, %arg2: memref<16xf32, #tpu.memory_space<smem>>, %arg3: memref<4xf32, #tpu.memory_space<smem>>, %arg4: memref<1x4x2x128xf32, #tpu.memory_space<vmem>>, %arg5: memref<1x4x2x128xf32, #tpu.memory_space<vmem>>) attributes {dimension_semantics = [#tpu.dimension_semantics<parallel>, #tpu.dimension_semantics<parallel>], iteration_bounds = array<i64: 2, 1>, scalar_prefetch = 0 : i64, scratch_operands = 0 : i64, tpu.core_type = #tpu.core_type<tc>, window_params = [{transform_indices = @transform_0, window_bounds = array<i64: 16>}, {transform_indices = @transform_1, window_bounds = array<i64: 4>}, {transform_indices = @transform_2, window_bounds = array<i64: 1, 4, 2, 128>}, {transform_indices = @transform_3, window_bounds = array<i64: 1, 4, 2, 128>}]} {
    %c0 = arith.constant 0 : index
    %c0_0 = arith.constant 0 : index
    %c0_1 = arith.constant 0 : index
    %c0_2 = arith.constant 0 : index
    %0 = vector.load %arg4[%c0, %c0_0, %c0_1, %c0_2] : memref<1x4x2x128xf32, #tpu.memory_space<vmem>>, vector<1x1x2x128xf32>
    %1 = vector.shape_cast %0 : vector<1x1x2x128xf32> to vector<2x128xf32>
    %c0_3 = arith.constant 0 : index
    %c1 = arith.constant 1 : index
    %c0_4 = arith.constant 0 : index
    %c0_5 = arith.constant 0 : index
    %2 = vector.load %arg4[%c0_3, %c1, %c0_4, %c0_5] : memref<1x4x2x128xf32, #tpu.memory_space<vmem>>, vector<1x1x2x128xf32>
    %3 = vector.shape_cast %2 : vector<1x1x2x128xf32> to vector<2x128xf32>
    %c0_6 = arith.constant 0 : index
    %c2 = arith.constant 2 : index
    %c0_7 = arith.constant 0 : index
    %c0_8 = arith.constant 0 : index
    %4 = vector.load %arg4[%c0_6, %c2, %c0_7, %c0_8] : memref<1x4x2x128xf32, #tpu.memory_space<vmem>>, vector<1x1x2x128xf32>
    %5 = vector.shape_cast %4 : vector<1x1x2x128xf32> to vector<2x128xf32>
    %c0_9 = arith.constant 0 : index
    %c3 = arith.constant 3 : index
    %c0_10 = arith.constant 0 : index
    %c0_11 = arith.constant 0 : index
    %6 = vector.load %arg4[%c0_9, %c3, %c0_10, %c0_11] : memref<1x4x2x128xf32, #tpu.memory_space<vmem>>, vector<1x1x2x128xf32>
    %7 = vector.shape_cast %6 : vector<1x1x2x128xf32> to vector<2x128xf32>
    %c0_12 = arith.constant 0 : index
    %8 = memref.load %arg2[%c0_12] : memref<16xf32, #tpu.memory_space<smem>>
    %9 = vector.broadcast %8 : f32 to vector<2x128xf32>
    %10 = arith.mulf %1, %9 : vector<2x128xf32>
    %c1_13 = arith.constant 1 : index
    %11 = memref.load %arg2[%c1_13] : memref<16xf32, #tpu.memory_space<smem>>
    %12 = vector.broadcast %11 : f32 to vector<2x128xf32>
    %13 = arith.mulf %3, %12 : vector<2x128xf32>
    %14 = arith.addf %10, %13 : vector<2x128xf32>
    %c2_14 = arith.constant 2 : index
    %15 = memref.load %arg2[%c2_14] : memref<16xf32, #tpu.memory_space<smem>>
    %16 = vector.broadcast %15 : f32 to vector<2x128xf32>
    %17 = arith.mulf %5, %16 : vector<2x128xf32>
    %18 = arith.addf %14, %17 : vector<2x128xf32>
    %c3_15 = arith.constant 3 : index
    %19 = memref.load %arg2[%c3_15] : memref<16xf32, #tpu.memory_space<smem>>
    %20 = vector.broadcast %19 : f32 to vector<2x128xf32>
    %21 = arith.mulf %7, %20 : vector<2x128xf32>
    %22 = arith.addf %18, %21 : vector<2x128xf32>
    %c0_16 = arith.constant 0 : index
    %23 = memref.load %arg3[%c0_16] : memref<4xf32, #tpu.memory_space<smem>>
    %24 = vector.broadcast %23 : f32 to vector<2x128xf32>
    %25 = arith.addf %22, %24 : vector<2x128xf32>
    %cst = arith.constant 0.707106769 : f32
    %26 = vector.broadcast %cst : f32 to vector<2x128xf32>
    %27 = arith.mulf %25, %26 : vector<2x128xf32>
    %28 = math.erf %27 : vector<2x128xf32>
    %cst_17 = arith.constant 5.000000e-01 : f32
    %29 = vector.broadcast %cst_17 : f32 to vector<2x128xf32>
    %30 = arith.mulf %29, %28 : vector<2x128xf32>
    %cst_18 = arith.constant 5.000000e-01 : f32
    %31 = vector.broadcast %cst_18 : f32 to vector<2x128xf32>
    %32 = arith.addf %30, %31 : vector<2x128xf32>
    %33 = arith.mulf %25, %32 : vector<2x128xf32>
    %c0_19 = arith.constant 0 : index
    %c0_20 = arith.constant 0 : index
    %c0_21 = arith.constant 0 : index
    %c0_22 = arith.constant 0 : index
    %34 = vector.load %arg5[%c0_19, %c0_20, %c0_21, %c0_22] : memref<1x4x2x128xf32, #tpu.memory_space<vmem>>, vector<1x1x2x128xf32>
    %35 = vector.shape_cast %34 : vector<1x1x2x128xf32> to vector<2x128xf32>
    %36 = vector.shape_cast %33 : vector<2x128xf32> to vector<1x1x2x128xf32>
    tpu.vector_store %arg5[%c0_19, %c0_20, %c0_21, %c0_22], %36 {strides = array<i32>} : memref<1x4x2x128xf32, #tpu.memory_space<vmem>>, vector<1x1x2x128xf32>,
    %c4 = arith.constant 4 : index
    %37 = memref.load %arg2[%c4] : memref<16xf32, #tpu.memory_space<smem>>
    %38 = vector.broadcast %37 : f32 to vector<2x128xf32>
    %39 = arith.mulf %1, %38 : vector<2x128xf32>
    %c5 = arith.constant 5 : index
    %40 = memref.load %arg2[%c5] : memref<16xf32, #tpu.memory_space<smem>>
    %41 = vector.broadcast %40 : f32 to vector<2x128xf32>
    %42 = arith.mulf %3, %41 : vector<2x128xf32>
    %43 = arith.addf %39, %42 : vector<2x128xf32>
    %c6 = arith.constant 6 : index
    %44 = memref.load %arg2[%c6] : memref<16xf32, #tpu.memory_space<smem>>
    %45 = vector.broadcast %44 : f32 to vector<2x128xf32>
    %46 = arith.mulf %5, %45 : vector<2x128xf32>
    %47 = arith.addf %43, %46 : vector<2x128xf32>
    %c7 = arith.constant 7 : index
    %48 = memref.load %arg2[%c7] : memref<16xf32, #tpu.memory_space<smem>>
    %49 = vector.broadcast %48 : f32 to vector<2x128xf32>
    %50 = arith.mulf %7, %49 : vector<2x128xf32>
    %51 = arith.addf %47, %50 : vector<2x128xf32>
    %c1_23 = arith.constant 1 : index
    %52 = memref.load %arg3[%c1_23] : memref<4xf32, #tpu.memory_space<smem>>
    %53 = vector.broadcast %52 : f32 to vector<2x128xf32>
    %54 = arith.addf %51, %53 : vector<2x128xf32>
    %cst_24 = arith.constant 0.707106769 : f32
    %55 = vector.broadcast %cst_24 : f32 to vector<2x128xf32>
    %56 = arith.mulf %54, %55 : vector<2x128xf32>
    %57 = math.erf %56 : vector<2x128xf32>
    %cst_25 = arith.constant 5.000000e-01 : f32
    %58 = vector.broadcast %cst_25 : f32 to vector<2x128xf32>
    %59 = arith.mulf %58, %57 : vector<2x128xf32>
    %cst_26 = arith.constant 5.000000e-01 : f32
    %60 = vector.broadcast %cst_26 : f32 to vector<2x128xf32>
    %61 = arith.addf %59, %60 : vector<2x128xf32>
    %62 = arith.mulf %54, %61 : vector<2x128xf32>
    %c0_27 = arith.constant 0 : index
    %c1_28 = arith.constant 1 : index
    %c0_29 = arith.constant 0 : index
    %c0_30 = arith.constant 0 : index
    %63 = vector.load %arg5[%c0_27, %c1_28, %c0_29, %c0_30] : memref<1x4x2x128xf32, #tpu.memory_space<vmem>>, vector<1x1x2x128xf32>
    %64 = vector.shape_cast %63 : vector<1x1x2x128xf32> to vector<2x128xf32>
    %65 = vector.shape_cast %62 : vector<2x128xf32> to vector<1x1x2x128xf32>
    tpu.vector_store %arg5[%c0_27, %c1_28, %c0_29, %c0_30], %65 {strides = array<i32>} : memref<1x4x2x128xf32, #tpu.memory_space<vmem>>, vector<1x1x2x128xf32>,
    %c8 = arith.constant 8 : index
    %66 = memref.load %arg2[%c8] : memref<16xf32, #tpu.memory_space<smem>>
    %67 = vector.broadcast %66 : f32 to vector<2x128xf32>
    %68 = arith.mulf %1, %67 : vector<2x128xf32>
    %c9 = arith.constant 9 : index
    %69 = memref.load %arg2[%c9] : memref<16xf32, #tpu.memory_space<smem>>
    %70 = vector.broadcast %69 : f32 to vector<2x128xf32>
    %71 = arith.mulf %3, %70 : vector<2x128xf32>
    %72 = arith.addf %68, %71 : vector<2x128xf32>
    %c10 = arith.constant 10 : index
    %73 = memref.load %arg2[%c10] : memref<16xf32, #tpu.memory_space<smem>>
    %74 = vector.broadcast %73 : f32 to vector<2x128xf32>
    %75 = arith.mulf %5, %74 : vector<2x128xf32>
    %76 = arith.addf %72, %75 : vector<2x128xf32>
    %c11 = arith.constant 11 : index
    %77 = memref.load %arg2[%c11] : memref<16xf32, #tpu.memory_space<smem>>
    %78 = vector.broadcast %77 : f32 to vector<2x128xf32>
    %79 = arith.mulf %7, %78 : vector<2x128xf32>
    %80 = arith.addf %76, %79 : vector<2x128xf32>
    %c2_31 = arith.constant 2 : index
    %81 = memref.load %arg3[%c2_31] : memref<4xf32, #tpu.memory_space<smem>>
    %82 = vector.broadcast %81 : f32 to vector<2x128xf32>
    %83 = arith.addf %80, %82 : vector<2x128xf32>
    %cst_32 = arith.constant 0.707106769 : f32
    %84 = vector.broadcast %cst_32 : f32 to vector<2x128xf32>
    %85 = arith.mulf %83, %84 : vector<2x128xf32>
    %86 = math.erf %85 : vector<2x128xf32>
    %cst_33 = arith.constant 5.000000e-01 : f32
    %87 = vector.broadcast %cst_33 : f32 to vector<2x128xf32>
    %88 = arith.mulf %87, %86 : vector<2x128xf32>
    %cst_34 = arith.constant 5.000000e-01 : f32
    %89 = vector.broadcast %cst_34 : f32 to vector<2x128xf32>
    %90 = arith.addf %88, %89 : vector<2x128xf32>
    %91 = arith.mulf %83, %90 : vector<2x128xf32>
    %c0_35 = arith.constant 0 : index
    %c2_36 = arith.constant 2 : index
    %c0_37 = arith.constant 0 : index
    %c0_38 = arith.constant 0 : index
    %92 = vector.load %arg5[%c0_35, %c2_36, %c0_37, %c0_38] : memref<1x4x2x128xf32, #tpu.memory_space<vmem>>, vector<1x1x2x128xf32>
    %93 = vector.shape_cast %92 : vector<1x1x2x128xf32> to vector<2x128xf32>
    %94 = vector.shape_cast %91 : vector<2x128xf32> to vector<1x1x2x128xf32>
    tpu.vector_store %arg5[%c0_35, %c2_36, %c0_37, %c0_38], %94 {strides = array<i32>} : memref<1x4x2x128xf32, #tpu.memory_space<vmem>>, vector<1x1x2x128xf32>,
    %c12 = arith.constant 12 : index
    %95 = memref.load %arg2[%c12] : memref<16xf32, #tpu.memory_space<smem>>
    %96 = vector.broadcast %95 : f32 to vector<2x128xf32>
    %97 = arith.mulf %1, %96 : vector<2x128xf32>
    %c13 = arith.constant 13 : index
    %98 = memref.load %arg2[%c13] : memref<16xf32, #tpu.memory_space<smem>>
    %99 = vector.broadcast %98 : f32 to vector<2x128xf32>
    %100 = arith.mulf %3, %99 : vector<2x128xf32>
    %101 = arith.addf %97, %100 : vector<2x128xf32>
    %c14 = arith.constant 14 : index
    %102 = memref.load %arg2[%c14] : memref<16xf32, #tpu.memory_space<smem>>
    %103 = vector.broadcast %102 : f32 to vector<2x128xf32>
    %104 = arith.mulf %5, %103 : vector<2x128xf32>
    %105 = arith.addf %101, %104 : vector<2x128xf32>
    %c15 = arith.constant 15 : index
    %106 = memref.load %arg2[%c15] : memref<16xf32, #tpu.memory_space<smem>>
    %107 = vector.broadcast %106 : f32 to vector<2x128xf32>
    %108 = arith.mulf %7, %107 : vector<2x128xf32>
    %109 = arith.addf %105, %108 : vector<2x128xf32>
    %c3_39 = arith.constant 3 : index
    %110 = memref.load %arg3[%c3_39] : memref<4xf32, #tpu.memory_space<smem>>
    %111 = vector.broadcast %110 : f32 to vector<2x128xf32>
    %112 = arith.addf %109, %111 : vector<2x128xf32>
    %cst_40 = arith.constant 0.707106769 : f32
    %113 = vector.broadcast %cst_40 : f32 to vector<2x128xf32>
    %114 = arith.mulf %112, %113 : vector<2x128xf32>
    %115 = math.erf %114 : vector<2x128xf32>
    %cst_41 = arith.constant 5.000000e-01 : f32
    %116 = vector.broadcast %cst_41 : f32 to vector<2x128xf32>
    %117 = arith.mulf %116, %115 : vector<2x128xf32>
    %cst_42 = arith.constant 5.000000e-01 : f32
    %118 = vector.broadcast %cst_42 : f32 to vector<2x128xf32>
    %119 = arith.addf %117, %118 : vector<2x128xf32>
    %120 = arith.mulf %112, %119 : vector<2x128xf32>
    %c0_43 = arith.constant 0 : index
    %c3_44 = arith.constant 3 : index
    %c0_45 = arith.constant 0 : index
    %c0_46 = arith.constant 0 : index
    %121 = vector.load %arg5[%c0_43, %c3_44, %c0_45, %c0_46] : memref<1x4x2x128xf32, #tpu.memory_space<vmem>>, vector<1x1x2x128xf32>
    %122 = vector.shape_cast %121 : vector<1x1x2x128xf32> to vector<2x128xf32>
    %123 = vector.shape_cast %120 : vector<2x128xf32> to vector<1x1x2x128xf32>
    tpu.vector_store %arg5[%c0_43, %c3_44, %c0_45, %c0_46], %123 {strides = array<i32>} : memref<1x4x2x128xf32, #tpu.memory_space<vmem>>, vector<1x1x2x128xf32>,
    return
  }
  func.func @transform_0(%arg0: i32, %arg1: i32) -> i32 {
    %c0_i32 = arith.constant 0 : i32
    %c0_i32_0 = arith.constant 0 : i32
    return %c0_i32 : i32
  }
  func.func @transform_1(%arg0: i32, %arg1: i32) -> i32 {
    %c0_i32 = arith.constant 0 : i32
    %c0_i32_0 = arith.constant 0 : i32
    return %c0_i32 : i32
  }
  func.func @transform_2(%arg0: i32, %arg1: i32) -> (i32, i32, i32, i32) {
    %c0_i32 = arith.constant 0 : i32
    %c0_i32_0 = arith.constant 0 : i32
    %c0_i32_1 = arith.constant 0 : i32
    return %arg0, %c0_i32, %arg1, %c0_i32_0 : i32, i32, i32, i32
  }
  func.func @transform_3(%arg0: i32, %arg1: i32) -> (i32, i32, i32, i32) {
    %c0_i32 = arith.constant 0 : i32
    %c0_i32_0 = arith.constant 0 : i32
    %c0_i32_1 = arith.constant 0 : i32
    return %arg0, %c0_i32, %arg1, %c0_i32_0 : i32, i32, i32, i32
  }
}

</mosaic_0001>

<bundles_post_ra>
// kernel: tpu_custom_call.1
= control target key start
LH: loop header
LB: loop body
LE: loop exit
PB: predicated region body
PF: predicated region fallthrough
CT: control target
= control target key end

     0   :  { %8 = vsyncpa [#allocation5], 0  ;;  %s1035_s0 = inlined_call_operand.hbm [shape: f32[16], index: 0, kind: input, shape index: {}]   ;;  %s1036_s1 = inlined_call_operand.vmem [shape: f32[4], index: 1, kind: input, shape index: {}]   ;;  %s1037_s2 = inlined_call_operand.hbm [shape: f32[2,4,2,128], index: 2, kind: input, shape index: {}]   ;;  %s1038_s3 = inlined_call_operand.hbm [shape: f32[2,4,2,128], index: 3, kind: output, shape index: {}]  }
   0x1   :  { %9 = vsyncpa [#allocation6], 0 }
   0x2   :  { %10 = vsyncpa [#allocation3], 0 }
   0x3   :  { %12 = vsyncpa [#allocation3 + $0x1], 0 }
   0x4   :  { %13 = vsyncpa [#allocation4], 0 }
   0x5   :  { %15 = vsyncpa [#allocation4 + $0x1], 0  ;;  %s779_s12 = smov 0   ;;  %s781_s13 = smov 0  }
   0x6   :  { %s783_s14 = smov 0   ;;  %s785_s15 = smov 0  }
   0x7   :  { %s787_s16 = smov 0   ;;  %s789_s17 = smov 0  }
   0x8 LB: > { %s461_s18 = sadd.s32 4294967295, %s749_s17   ;;  %s462_s19 = sadd.s32 4294967294, %s749_s17   ;;  %s749_s17 = sphi %s789_s17, %s21_s17   ;;  %s745_s16 = sphi %s787_s16, %s1061_s16   ;;  %s741_s15 = sphi %s785_s15, %s1060_s15   ;;  %s737_s14 = sphi %s783_s14, %s1059_s14   ;;  %s733_s13 = sphi %s781_s13, %s1058_s13   ;;  %s729_s12 = sphi %s779_s12, %s1057_s12  }
   0x9   : > { %s84_s20 = sadd.s32 1, %s737_s14  ;;  %p91_p0 = scmp.ne.s32.totalorder %s737_s14, %s733_s13 }
   0xa   : > { %p92_p1 = scmp.eq.s32.totalorder %s749_s17, 0  ;;  %p97_p2 = scmp.ne.s32.totalorder %s733_s13, %s729_s12 }
   0xb   : > { %p817_p3 = scmp.eq.s32.totalorder %s461_s18, 0  ;;  %p123_p4 = scmp.eq.s32.totalorder %s461_s18, 1 }
   0xc   : > { %p93_p5 = por %p92_p1, %p91_p0  ;;  %p129_p6 = scmp.eq.s32.totalorder %s462_s19, 1 }
   0xd   : > { %s1044_s21 = scalar_select %p817_p3, 1, 0 }
   0xe   : > { %p823_p7 = por %p817_p3, %p97_p2  ;;  %p827_p8 = por %p123_p4, %p91_p0 }
   0xf   : > { %p831_p9 = por %p129_p6, %p97_p2  ;;  %p463_p10 = scmp.ge.s32.totalorder %s749_s17, 1 }
  0x10   : > { %s1045_s22 = scalar_select %p823_p7, 1, 0 }
  0x11   : > { %s1046_s23 = scalar_select %p827_p8, 1, 0 }
  0x12   : > { %s1047_s24 = scalar_select %p831_p9, 1, 0 }
  0x13   : > { %p136_p11 = scmp.lt.s32.totalorder %s749_s17, 3  ;;  %p535_p1 = scmp.lt.s32.totalorder %s749_s17, 2 }
  0x14   : > { %s158_s28 = sshll.u32 %s1036_s1, 4  ;;  %s169_s4 = sand.u32 1, %s737_s14   ;;  %s159_s28 = int_to_ptr.vmem [resolvable:$true] %s158_s28 }
  0x15   : > { %p838_p13 = pnand %p463_p10, %p136_p11  ;;  %p848_p4 = pnand %p535_p1, %p93_p5 }
  0x16   : > { %s33_s5 = sadd.s32 1, %s745_s16  ;;  %s601_s8 = scalar_lea.hbm %s1035_s0, 16 }
  0x17   : > { %p518_p0 = pneg %p838_p13  ;;  %p602_p5 = scmp.ne.s32.totalorder %s1035_s0, %s601_s8 }
  0x18   : > { %p608_p1 = scmp.lt.u32.totalorder %s601_s8, %s1035_s0 }
  0x19   : > { %p854_p2 = pnand %p518_p0, %p817_p3 }
  0x1b   : > { %p603_p6 = pneg %p854_p2 }
  0x1d   : > { %p604_p10 = pnand %p603_p6, %p602_p5 }
  0x1f   : > { %p605_p11 = pneg %p604_p10 }
  0x21   : > { %p610_p0 = pnand %p608_p1, %p605_p11 }
  0x23   : > { %613 = shalt.err (!%p610_p0)
}
  0x24   : > { %s751_s19 = smov [#allocation2]   ;;  %s614_s6 = scalar_lea.vmem %s159_s28, 16 }
  0x25   : > { %521 = dma.hbm_to_smem (!%p854_p2), %s1035_s0, 16, %s751_s19, [#allocation5]  }
  0x26   : > { %p615_p12 = scmp.ne.s32.totalorder %s159_s28, %s614_s6  ;;  %p622_p7 = scmp.lt.s32.totalorder %s159_s28, %s159_s28 }
  0x27   : > { %p623_p5 = scmp.lt.s32.totalorder %s614_s6, %s614_s6 }
  0x28   : > { %p617_p9 = pnand %p615_p12, %p603_p6 }
  0x29   : > { %p624_p10 = por %p623_p5, %p622_p7 }
  0x2a   : > { %p618_p8 = pneg %p617_p9 }
  0x2c   : > { %p625_p3 = pnand %p624_p10, %p618_p8 }
  0x2e   : > { %628 = shalt.err (!%p625_p3)
}
  0x2f   : > { %s752_s7 = smov [#allocation7]   ;;  %p35_p11 = scmp.ge.s32.totalorder %s33_s5, 2 }
  0x30   : > { %524 = dma.vmem_to_smem (!%p854_p2), %s159_s28, 16, %s752_s7, [#allocation6]  }
  0x31   : > { %s467_s8 = sshll.u32 %s169_s4, 3  ;;  %s504_s9 = sshll.u32 %s745_s16, 7 }
  0x32   : > { %s1063_s5 = smov (%p35_p11, %s33_s5), 0  ;;  %s886_s30 = scalar_lea.hbm %s1037_s2, %s504_s9 }
  0x33   : > { %s79_s18 = ssub.s32 %s745_s16, %s1063_s5  ;;  %s173_s19 = scalar_lea.vmem [#allocation8], %s467_s8 }
  0x34   : > { %s181_s28 = sshll.u32 %s173_s19, 4  ;;  %p82_p3 = scmp.eq.s32.totalorder %s79_s18, 0  ;;  %s890_s28 = int_to_ptr.vmem [resolvable:$true] %s181_s28 }
  0x35   : > { %s899_s27 = scalar_lea.sflag [#allocation3], %s169_s4  ;;  %s629_s6 = scalar_lea.hbm %s886_s30, 128 }
  0x36   : > { %s895_s26 = scalar_select %p82_p3, %s737_s14, %s84_s20  }
  0x37   : > { %p630_p7 = scmp.ne.s32.totalorder %s886_s30, %s629_s6  ;;  %p631_p8 = pneg %p848_p4 }
  0x38   : > { %s634_s9 = scalar_lea.hbm %s1037_s2, 256  ;;  %p635_p2 = scmp.lt.u32.totalorder %s886_s30, %s1037_s2 }
  0x39   : > { %p632_p9 = pnand %p631_p8, %p630_p7  ;;  %p636_p6 = scmp.lt.u32.totalorder %s634_s9, %s629_s6 }
  0x3a   : > { %p638_p0 = scmp.lt.u32.totalorder %s629_s6, %s886_s30 }
  0x3b   : > { %p633_p12 = pneg %p632_p9  ;;  %p637_p1 = por %p636_p6, %p635_p2 }
  0x3d   : > { %p639_p5 = por %p638_p0, %p637_p1 }
  0x3f   : > { %p640_p10 = pnand %p639_p5, %p633_p12 }
  0x41   : > { %643 = shalt.err (!%p640_p10)
}
  0x42   : > { %s644_s20 = scalar_lea.vmem %s890_s28, 128  ;;  %s753_s4 = smov [#allocation8]  }
  0x43   : > { %p645_p11 = scmp.ne.s32.totalorder %s890_s28, %s644_s20  ;;  %s649_s18 = sshll.u32 %s753_s4, 4  ;;  %s650_s18 = int_to_ptr.vmem [resolvable:$false] %s649_s18 }
  0x44   : > { %s651_s19 = scalar_lea.vmem %s650_s18, 256  ;;  %p652_p9 = scmp.lt.s32.totalorder %s890_s28, %s650_s18 }
  0x45   : > { %p647_p3 = pnand %p645_p11, %p631_p8  ;;  %p653_p2 = scmp.lt.s32.totalorder %s651_s19, %s644_s20 }
  0x47   : > { %p648_p7 = pneg %p647_p3  ;;  %p654_p6 = por %p653_p2, %p652_p9 }
  0x49   : > { %p655_p1 = pnand %p654_p6, %p648_p7 }
  0x4b   : > { %658 = shalt.err (!%p655_p1)
}
  0x4c   : > { %s754_s6 = smov 32   ;;  %s755_s7 = smov 2  }
  0x4d   : > { %528 = dma.hbm_to_vmem [thread:$0]  (!%p848_p4), %s886_s30, 128, %s890_s28, %s899_s27, %s754_s6, %s754_s6, %s755_s7  }
  0x4e   : > { %193 = sbr.rel (%p838_p13) target bundleno = 154 (0x9a), region = 32  ;;  %p1051_p8 = scmp.ne.s32.totalorder (!%p838_p13), %s1044_s21, 0 }
  0x55   : > { %712 = dma.done.wait (%p1051_p8), [#allocation5], 16  }
  0x56   : > { %714 = vsyncadd (%p1051_p8), [#allocation5], 4294967280 }
  0x57   : > { %716 = dma.done.wait (%p1051_p8), [#allocation6], 16  }
  0x58   : > { %718 = vsyncadd (%p1051_p8), [#allocation6], 4294967280  ;;  %s938_s8 = sand.u32 1, %s733_s13   ;;  %p1052_p13 = scmp.ne.s32.totalorder %s1045_s22, 0 }
  0x59   : > { %s1043_s25 = sshll.u32 %s938_s8, 3  ;;  %s204_s29 = scalar_lea.sflag [#allocation3], %s938_s8 }
  0x5a   : > { %s207_s30 = scalar_lea.vmem [#allocation8], %s1043_s25 }
  0x5b   : > { %720 = dma.done.wait (%p1052_p13), %s204_s29, 128  }
  0x5c   : > { %722 = vsyncadd (%p1052_p13), %s204_s29, 4294967168 }
  0x5d   : > { %212 = sfence }
  0x5e   : > { %s238_s28 = sld [smem:[#allocation2]]  ;;  %s478_s21 = sld [smem:[#allocation2 + $0x1]]  ;;  %v231_v0 = vld [vmem:[%s207_s30] sm:$0x3]  ;;  %v475_v1 = vld [vmem:[%s207_s30 + $0x2] sm:$0x3] }
  0x5f   : > { %s479_s27 = sld [smem:[#allocation2 + $0x2]]  ;;  %s480_s9 = sld [smem:[#allocation2 + $0x3]]  ;;  %v476_v2 = vld [vmem:[%s207_s30 + $0x4] sm:$0x3]  ;;  %v477_v4 = vld [vmem:[%s207_s30 + $0x6] sm:$0x3] }
  0x60   : > { %s481_s10 = sld [smem:[#allocation2 + $0x4]]  ;;  %s948_s11 = sld [smem:[#allocation7]] }
  0x61   : > { %s482_s20 = sld [smem:[#allocation2 + $0x5]]  ;;  %s950_s4 = sld [smem:[#allocation2 + $0x6]] }
  0x62   : > { %s484_s18 = sld [smem:[#allocation2 + $0x7]]  ;;  %s952_s19 = sld [smem:[#allocation7 + $0x1]] }
  0x63   : > { %s954_s22 = sld [smem:[#allocation2 + $0x8]]  ;;  %s488_s6 = sld [smem:[#allocation2 + $0x9]] }
  0x64   : > { %v239_v3 = vstv %s238_s28  ;;  %v242_v6 = vstv %s478_s21  ;;  %s489_s7 = sld [smem:[#allocation2 + $0xa]]  ;;  %s956_s29 = sld [smem:[#allocation2 + $0xb]] }
  0x65   : > { %v240_v5 = vmul.f32 %v239_v3, %v231_v0  ;;  %v246_v7 = vstv %s479_s27  ;;  %v243_v8 = vmul.f32 %v475_v1, %v242_v6  ;;  %v250_v10 = vstv %s480_s9  ;;  %s958_s25 = sld [smem:[#allocation2 + $0xc]]  ;;  %s960_s28 = sld [smem:[#allocation2 + $0xd]] }
  0x66   : > { %v247_v9 = vmul.f32 %v476_v2, %v246_v7  ;;  %v263_v11 = vstv %s481_s10  ;;  %v251_v13 = vmul.f32 %v477_v4, %v250_v10  ;;  %s962_s30 = sld [smem:[#allocation2 + $0xe]]  ;;  %s964_s21 = sld [smem:[#allocation2 + $0xf]]  ;;  %v254_v20 = vstv %s948_s11 }
  0x67   : > { %v244_v12 = vadd.f32 %v243_v8, %v240_v5  ;;  %v264_v14 = vmul.f32 %v263_v11, %v231_v0  ;;  %v266_v15 = vstv %s482_s20  ;;  %v270_v17 = vstv %s950_s4  ;;  %s967_s27 = sld [smem:[#allocation7 + $0x2]]  ;;  %s497_s9 = sld [smem:[#allocation7 + $0x3]] }
  0x68   : > { %v267_v16 = vmul.f32 %v475_v1, %v266_v15  ;;  %v274_v18 = vstv %s484_s18  ;;  %v271_v21 = vmul.f32 %v476_v2, %v270_v17  ;;  %v278_v32 = vstv %s952_s19  ;;  %s505_s20 = sshll.u32 %s741_s15, 7  ;;  %p1054_p12 = scmp.ne.s32.totalorder %s1046_s23, 0 }
  0x69   : > { %v248_v19 = vadd.f32 %v247_v9, %v244_v12  ;;  %v275_v22 = vmul.f32 %v477_v4, %v274_v18  ;;  %v288_v24 = vstv %s954_s22  ;;  %v291_v25 = vstv %s488_s6  ;;  %s986_s19 = scalar_lea.hbm %s1038_s3, %s505_s20  ;;  %s338_s22 = scalar_lea.sflag [#allocation4], %s938_s8 }
  0x6a   : > { %v268_v23 = vadd.f32 %v267_v16, %v264_v14  ;;  %v295_v26 = vstv %s489_s7  ;;  %v289_v28 = vmul.f32 %v288_v24, %v231_v0  ;;  %v292_v29 = vmul.f32 %v475_v1, %v291_v25  ;;  %s756_s15 = smov [#allocation9]  }
  0x6b   : > { %v252_v27 = vadd.f32 %v251_v13, %v248_v19  ;;  %v296_v30 = vmul.f32 %v476_v2, %v295_v26  ;;  %v299_v33 = vstv %s956_s29  ;;  %v313_v34 = vstv %s958_s25  ;;  %s1053_s25 = sshll.u32 %s938_s8, 3  ;;  %s663_s7 = sshll.u32 %s756_s15, 4  ;;  %s664_s7 = int_to_ptr.vmem [resolvable:$false] %s663_s7 }
  0x6c   : > { %v272_v31 = vadd.f32 %v271_v21, %v268_v23  ;;  %v293_v36 = vadd.f32 %v292_v29, %v289_v28  ;;  %v300_v37 = vmul.f32 %v477_v4, %v299_v33  ;;  %v314_v38 = vmul.f32 %v313_v34, %v231_v0  ;;  %s230_s10 = scalar_lea.vmem [#allocation9], %s1053_s25  ;;  %s665_s29 = scalar_lea.vmem %s664_s7, 256 }
  0x6d   : > { %v255_v35 = vadd.f32 %v254_v20, %v252_v27  ;;  %v316_v40 = vstv %s960_s28  ;;  %v320_v41 = vstv %s962_s30  ;;  %v324_v42 = vstv %s964_s21  ;;  %s352_s11 = sshll.u32 %s230_s10, 4  ;;  %s981_s11 = int_to_ptr.vmem [resolvable:$true] %s352_s11 }
  0x6e   : > { %v276_v39 = vadd.f32 %v275_v22, %v272_v31  ;;  %v297_v44 = vadd.f32 %v296_v30, %v293_v36  ;;  %v317_v45 = vmul.f32 %v475_v1, %v316_v40  ;;  %v321_v46 = vmul.f32 %v476_v2, %v320_v41  ;;  %s659_s6 = scalar_lea.vmem %s981_s11, 128  ;;  %p666_p10 = scmp.lt.s32.totalorder %s981_s11, %s664_s7 }
  0x6f   : > { %v256_v43 = vmul.f32 0.70710677, %v255_v35  ;;  %v303_v48 = vstv %s967_s27  ;;  %v325_v51 = vmul.f32 %v477_v4, %v324_v42  ;;  %v328_v55 = vstv %s497_s9  ;;  %p660_p4 = scmp.ne.s32.totalorder %s981_s11, %s659_s6  ;;  %p667_p11 = scmp.lt.s32.totalorder %s665_s29, %s659_s6 }
  0x70   : > { %v279_v47 = vadd.f32 %v278_v32, %v276_v39  ;;  %v301_v49 = vadd.f32 %v300_v37, %v297_v44  ;;  %v318_v50 = vadd.f32 %v317_v45, %v314_v38 }
  0x71   : > { %593 = verf.f32 %v256_v43  ;;  %p661_p0 = pnand %p660_p4, %p1054_p12  ;;  %p668_p3 = por %p667_p11, %p666_p10 }
  0x72   : > { %v280_v52 = vmul.f32 0.70710677, %v279_v47  ;;  %v304_v53 = vadd.f32 %v303_v48, %v301_v49  ;;  %v322_v54 = vadd.f32 %v321_v46, %v318_v50 }
  0x73   : > { %p662_p5 = pneg %p661_p0 }
  0x74   : > { %595 = verf.f32 %v280_v52  ;;  %v305_v56 = vmul.f32 0.70710677, %v304_v53  ;;  %v326_v57 = vadd.f32 %v325_v51, %v322_v54 }
  0x75   : > { %p669_p7 = pnand %p668_p3, %p662_p5 }
  0x76   : > { %597 = verf.f32 %v305_v56  ;;  %v329_v58 = vadd.f32 %v328_v55, %v326_v57 }
  0x78   : > { %v330_v59 = vmul.f32 0.70710677, %v329_v58 }
  0x7a   : > { %599 = verf.f32 %v330_v59 }
  0x7b   : > { %v594_v60 = vpop.eup %593 }
  0x7c   : > { %v258_v61 = vmul.f32 0.5, %v594_v60 }
  0x7e   : > { %v596_v62 = vpop.eup %595  ;;  %v259_v63 = vadd.f32 0.5, %v258_v61 }
  0x7f   : > { %v282_v0 = vmul.f32 0.5, %v596_v62 }
  0x80   : > { %v260_v1 = vmul.f32 %v259_v63, %v255_v35  ;;  %v598_v2 = vpop.eup %597 }
  0x81   : > { %v283_v3 = vadd.f32 0.5, %v282_v0  ;;  %v307_v4 = vmul.f32 0.5, %v598_v2 }
  0x82   : > { %261 = vst [vmem:[%s230_s10] sm:$0x3] %v260_v1 }
  0x83   : > { %v284_v5 = vmul.f32 %v283_v3, %v279_v47  ;;  %v308_v6 = vadd.f32 0.5, %v307_v4 }
  0x84   : > { %v600_v7 = vpop.eup %599 }
  0x85   : > { %486 = vst [vmem:[%s230_s10 + $0x2] sm:$0x3] %v284_v5  ;;  %v309_v8 = vmul.f32 %v308_v6, %v304_v53  ;;  %v332_v9 = vmul.f32 0.5, %v600_v7 }
  0x87   : > { %492 = vst [vmem:[%s230_s10 + $0x4] sm:$0x3] %v309_v8  ;;  %v333_v10 = vadd.f32 0.5, %v332_v9 }
  0x89   : > { %v334_v11 = vmul.f32 %v333_v10, %v329_v58 }
  0x8b   : > { %498 = vst [vmem:[%s230_s10 + $0x6] sm:$0x3] %v334_v11 }
  0x8c   : > { %672 = shalt.err (!%p669_p7)
}
  0x8d   : > { %s673_s28 = scalar_lea.hbm %s986_s19, 128  ;;  %s677_s27 = scalar_lea.hbm %s1038_s3, 256 }
  0x8e   : > { %p674_p9 = scmp.ne.s32.totalorder %s986_s19, %s673_s28  ;;  %p678_p1 = scmp.lt.u32.totalorder %s986_s19, %s1038_s3 }
  0x8f   : > { %p679_p8 = scmp.lt.u32.totalorder %s677_s27, %s673_s28  ;;  %p681_p4 = scmp.lt.u32.totalorder %s673_s28, %s986_s19 }
  0x90   : > { %p675_p2 = pnand %p674_p9, %p1054_p12 }
  0x91   : > { %p680_p13 = por %p679_p8, %p678_p1 }
  0x92   : > { %p676_p6 = pneg %p675_p2 }
  0x93   : > { %p682_p0 = por %p681_p4, %p680_p13 }
  0x95   : > { %p683_p5 = pnand %p682_p0, %p676_p6 }
  0x97   : > { %686 = shalt.err (!%p683_p5)
}
  0x98   : > { %s757_s10 = smov 32   ;;  %s758_s20 = smov 2  }
  0x99   : > { %516 = dma.vmem_to_hbm [thread:$0]  (%p1054_p12), %s981_s11, 128, %s986_s19, %s338_s22, %s757_s10, %s757_s10, %s758_s20  }
  0x9a PF: > { %s367_s4 = sand.u32 1, %s729_s12   ;;  %p1055_p10 = scmp.ne.s32.totalorder %s1047_s24, 0 }
  0x9b   : > { %p1056_p11 = scmp.ge.s32.totalorder %s749_s17, 2  ;;  %s368_s18 = scalar_lea.sflag [#allocation4], %s367_s4 }
  0x9d   : > { %p530_p3 = pnand %p1056_p11, %p1055_p10 }
  0x9f   : > { %724 = dma.done.wait (!%p530_p3), %s368_s18, 128  }
  0xa0   : > { %726 = vsyncadd (!%p530_p3), %s368_s18, 4294967168  ;;  %s21_s17 = sadd.s32 1, %s749_s17   ;;  %s1057_s12 = smov %s733_s13 }
  0xa1   : > { %p18_p7 = scmp.ge.s32.totalorder %s21_s17, 4   ;;  %s1058_s13 = smov %s737_s14 }
  0xa2   : > { %s1059_s14 = smov %s895_s26  ;;  %s1060_s15 = smov %s745_s16 }
  0xa3   : > { %s1061_s16 = smov %s1063_s5  ;;  %20 = sbr.rel (!%p18_p7) target bundleno = 8 (0x8), region = 93 }
  0xaa   :  { %373 = vsyncpa [#allocation3], 1 }
  0xab   :  { %375 = vsyncpa [#allocation3 + $0x1], 1 }
  0xac   :  { %376 = vsyncpa [#allocation4], 1 }
  0xad   :  { %378 = vsyncpa [#allocation4 + $0x1], 1 }
  0xae   :  { %379 = vsyncpa [#allocation5], 1 }
  0xaf   :  { %381 = vsyncpa [#allocation5 + $0x1], 1 }
  0xb0   :  { %382 = vsyncpa [#allocation6], 1 }
  0xb1   :  { %384 = vsyncpa [#allocation6 + $0x1], 1 }

</bundles_post_ra>
